<compile_context>
chip_gen: v5e
topology: v5e:2x2
jax: 0.10.0
libtpu: 0.0.40
codegen_flags: <defaults>
</compile_context>

<pallas_src>
import math

import jax
import jax.numpy as jnp
from jax.experimental import pallas as pl
from jax.experimental.pallas import tpu as pltpu

LANE = 128          # pad feature dims to multiples of the lane width
SUBLANE_BF16 = 16   # bf16 packs 16 rows per vreg on the sublane axis


def _round_up(n, m):
    return ((n + m - 1) // m) * m


def dqn_kernel(x_ref, w1_ref, b1_ref, w2_ref, b2_ref, w3_ref, b3_ref, o_ref):
    # Cast the f32 input tile to bf16 in-kernel (VPU, hidden under the matmuls)
    x = x_ref[...].astype(jnp.bfloat16)
    # fc1 + relu: bf16 MXU operands, f32 accumulation
    h1 = jnp.dot(x, w1_ref[...], preferred_element_type=jnp.float32)
    h1 = jnp.maximum(h1 + b1_ref[...], 0.0).astype(jnp.bfloat16)
    # fc2 + relu
    h2 = jnp.dot(h1, w2_ref[...], preferred_element_type=jnp.float32)
    h2 = jnp.maximum(h2 + b2_ref[...], 0.0).astype(jnp.bfloat16)
    # fc3 (no activation); padded output columns stay zero by construction.
    out = jnp.dot(h2, w3_ref[...], preferred_element_type=jnp.float32)
    o_ref[...] = (out + b3_ref[...]).astype(o_ref.dtype)   # bf16 lane-dense store


def dqn_forward(x, params, out_dim, *, block_b=8192, core_parallel=False):
    """x: [B, input_dim] f32; params: 128-padded bf16 weights / f32 biases.

    Returns [B, out_dim] f32 Q-values. Internally the whole minibatch runs in
    one pallas_call (usually a single grid step).
    """
    w1, b1 = params["w1"], params["b1"]
    w2, b2 = params["w2"], params["b2"]
    w3, b3 = params["w3"], params["b3"]

    B, d_in = x.shape
    h_pad = w1.shape[1]
    out_pad = w3.shape[1]

    # One grid step for typical minibatches; ragged last block is handled by
    # Pallas bounds-aware DMA. OOB input rows are unspecified, which is fine
    # because the output array has exactly B rows (nothing leaks out).
    assert block_b % SUBLANE_BF16 == 0
    tb = min(_round_up(B, SUBLANE_BF16), block_b)
    nb = pl.cdiv(B, tb)

    weight_bytes = (w1.size + w2.size + w3.size) * 2 + (b1.size + b2.size + b3.size) * 4
    flops = 2 * B * (d_in * h_pad + h_pad * h_pad + h_pad * out_pad)
    bytes_accessed = x.size * 4 + weight_bytes + B * out_pad * 2

    # Double-buffered x (f32) + out (bf16) tiles plus resident weights; only
    # pass an explicit limit when we would blow the 16 MiB v5e scoped default.
    vmem_need = 2 * (tb * d_in * 4 + tb * out_pad * 2) + weight_bytes + (2 << 20)
    vmem_limit = int(vmem_need) if vmem_need > (14 << 20) else None

    # PARALLEL is safe everywhere; CORE_PARALLEL engages both v7x TensorCores
    # when nb >= 2 (each core keeps its own ~68 KB resident weight copy).
    dim_sem = pltpu.CORE_PARALLEL if core_parallel else pltpu.PARALLEL

    # Weights/biases: full-array blocks, constant index_map -> VMEM-resident
    # across all batch grid steps (no re-DMA).
    def full_const(arr):
        return pl.BlockSpec(arr.shape, lambda i: (0,) * arr.ndim)

    out_padded = pl.pallas_call(
        dqn_kernel,
        out_shape=jax.ShapeDtypeStruct((B, out_pad), jnp.bfloat16),
        grid=(nb,),
        in_specs=[
            pl.BlockSpec((tb, d_in), lambda i: (i, 0)),   # x: batch-tiled, f32
            full_const(w1), full_const(b1),
            full_const(w2), full_const(b2),
            full_const(w3), full_const(b3),
        ],
        out_specs=pl.BlockSpec((tb, out_pad), lambda i: (i, 0)),
        compiler_params=pltpu.CompilerParams(
            dimension_semantics=(dim_sem,),
            vmem_limit_bytes=vmem_limit),
        cost_estimate=pl.CostEstimate(
            flops=flops, transcendentals=0, bytes_accessed=bytes_accessed),
    )(x, w1, b1, w2, b2, w3, b3)

    # Single tiny fused slice+cast over [B, out_dim]; Q-values exposed as f32.
    return out_padded[:, :out_dim].astype(jnp.float32)


def xavier_uniform(key, fan_in, fan_out, dtype=jnp.float32):
    # Matches torch.nn.init.xavier_uniform_: U(-a, a), a = sqrt(6/(fan_in+fan_out))
    a = math.sqrt(6.0 / (fan_in + fan_out))
    # Generate in PyTorch's [out, in] shape then transpose to [in, out] layout.
    w = jax.random.uniform(key, (fan_out, fan_in), dtype=dtype, minval=-a, maxval=a)
    return w.T


def _pad2(w, rows, cols):
    return jnp.pad(w, ((0, rows - w.shape[0]), (0, cols - w.shape[1])))


def init_dqn_params(key, input_dim, hidden_dim, output_dim):
    """Xavier-uniform weights / zero biases, zero-padded to 128-lane shapes,
    weights cast to bf16 (f32 accumulation happens in the kernel).

    NOTE: padded hidden/output columns and the bias padding must stay zero for
    the padded-column invariant; re-apply the zero-pad if loading a checkpoint.
    """
    k1, k2, k3 = jax.random.split(key, 3)
    h_pad = _round_up(hidden_dim, LANE)
    out_pad = _round_up(output_dim, LANE)
    w1 = _pad2(xavier_uniform(k1, input_dim, hidden_dim), input_dim, h_pad)
    w2 = _pad2(xavier_uniform(k2, hidden_dim, hidden_dim), h_pad, h_pad)
    w3 = _pad2(xavier_uniform(k3, hidden_dim, output_dim), h_pad, out_pad)
    return {
        "w1": w1.astype(jnp.bfloat16),
        "b1": jnp.zeros((1, h_pad), jnp.float32),
        "w2": w2.astype(jnp.bfloat16),
        "b2": jnp.zeros((1, h_pad), jnp.float32),
        "w3": w3.astype(jnp.bfloat16),
        "b3": jnp.zeros((1, out_pad), jnp.float32),
    }


if __name__ == "__main__":
    key = jax.random.PRNGKey(0)
    kx, kp = jax.random.split(key)

    # Whole replay minibatch in one fused call.
    B, input_dim, hidden_dim, output_dim = 16, 16, 32, 4
    x = jax.random.normal(kx, (B, input_dim), dtype=jnp.float32)
    params = init_dqn_params(kp, input_dim, hidden_dim, output_dim)

    out = jax.block_until_ready(dqn_forward(x, params, output_dim))

    # Pure-JAX reference with identical bf16 forward semantics (bf16 activations
    # and bf16 output store). NOTE: bf16 intentionally diverges from a pure-f32
    # PyTorch DQN; error stays well inside the tolerance below.
    xb = x.astype(jnp.bfloat16)
    h = jnp.maximum(
        jnp.dot(xb, params["w1"], preferred_element_type=jnp.float32)
        + params["b1"], 0.0).astype(jnp.bfloat16)
    h = jnp.maximum(
        jnp.dot(h, params["w2"], preferred_element_type=jnp.float32)
        + params["b2"], 0.0).astype(jnp.bfloat16)
    ref = (jnp.dot(h, params["w3"], preferred_element_type=jnp.float32)
           + params["b3"])
    ref = ref.astype(jnp.bfloat16).astype(jnp.float32)[:, :output_dim]

    assert out.shape == (B, output_dim)
    assert out.dtype == jnp.float32
    assert jnp.allclose(out, ref, atol=1e-2, rtol=1e-2)

    print("KERNEL_OK")
</pallas_src>

<mosaic_0001>
module attributes {stable_mosaic.version = 11 : i64} {
  func.func @dqn_kernel(%arg0: i32, %arg1: memref<16x16xf32, #tpu.memory_space<vmem>>, %arg2: memref<16x128xbf16, #tpu.memory_space<vmem>>, %arg3: memref<1x128xf32, #tpu.memory_space<vmem>>, %arg4: memref<128x128xbf16, #tpu.memory_space<vmem>>, %arg5: memref<1x128xf32, #tpu.memory_space<vmem>>, %arg6: memref<128x128xbf16, #tpu.memory_space<vmem>>, %arg7: memref<1x128xf32, #tpu.memory_space<vmem>>, %arg8: memref<16x128xbf16, #tpu.memory_space<vmem>>) attributes {dimension_semantics = [#tpu.dimension_semantics<parallel>], iteration_bounds = array<i64: 1>, scalar_prefetch = 0 : i64, scratch_operands = 0 : i64, tpu.core_type = #tpu.core_type<tc>, window_params = [{transform_indices = @transform_0, window_bounds = array<i64: 16, 16>}, {pipeline_mode = #tpu.pipeline_mode<synchronous>, transform_indices = @transform_1, window_bounds = array<i64: 16, 128>}, {pipeline_mode = #tpu.pipeline_mode<synchronous>, transform_indices = @transform_2, window_bounds = array<i64: 1, 128>}, {pipeline_mode = #tpu.pipeline_mode<synchronous>, transform_indices = @transform_3, window_bounds = array<i64: 128, 128>}, {pipeline_mode = #tpu.pipeline_mode<synchronous>, transform_indices = @transform_4, window_bounds = array<i64: 1, 128>}, {pipeline_mode = #tpu.pipeline_mode<synchronous>, transform_indices = @transform_5, window_bounds = array<i64: 128, 128>}, {pipeline_mode = #tpu.pipeline_mode<synchronous>, transform_indices = @transform_6, window_bounds = array<i64: 1, 128>}, {transform_indices = @transform_7, window_bounds = array<i64: 16, 128>}]} {
    %c0 = arith.constant 0 : index
    %c0_0 = arith.constant 0 : index
    %0 = vector.load %arg1[%c0, %c0_0] : memref<16x16xf32, #tpu.memory_space<vmem>>, vector<16x16xf32>
    %1 = arith.truncf %0 : vector<16x16xf32> to vector<16x16xbf16>
    %c0_1 = arith.constant 0 : index
    %c0_2 = arith.constant 0 : index
    %2 = vector.load %arg2[%c0_1, %c0_2] : memref<16x128xbf16, #tpu.memory_space<vmem>>, vector<16x128xbf16>
    %cst = arith.constant dense<0.000000e+00> : vector<16x128xf32>
    %3 = tpu.matmul %1, %2, %cst {dimension_numbers = #tpu.dot_dimension_numbers<[1], [0], [0], [1], [0, 0, 1, 1], [], []>} : vector<16x16xbf16>, vector<16x128xbf16>, vector<16x128xf32> -> vector<16x128xf32>
    %c0_3 = arith.constant 0 : index
    %c0_4 = arith.constant 0 : index
    %4 = vector.load %arg3[%c0_3, %c0_4] : memref<1x128xf32, #tpu.memory_space<vmem>>, vector<1x128xf32>
    %5 = vector.broadcast %4 : vector<1x128xf32> to vector<16x128xf32>
    %6 = arith.addf %3, %5 : vector<16x128xf32>
    %cst_5 = arith.constant 0.000000e+00 : f32
    %7 = vector.broadcast %cst_5 : f32 to vector<16x128xf32>
    %8 = arith.maximumf %6, %7 : vector<16x128xf32>
    %9 = arith.truncf %8 : vector<16x128xf32> to vector<16x128xbf16>
    %c0_6 = arith.constant 0 : index
    %c0_7 = arith.constant 0 : index
    %10 = vector.load %arg4[%c0_6, %c0_7] : memref<128x128xbf16, #tpu.memory_space<vmem>>, vector<128x128xbf16>
    %cst_8 = arith.constant dense<0.000000e+00> : vector<16x128xf32>
    %11 = tpu.matmul %9, %10, %cst_8 {dimension_numbers = #tpu.dot_dimension_numbers<[1], [0], [0], [1], [0, 0, 1, 1], [], []>} : vector<16x128xbf16>, vector<128x128xbf16>, vector<16x128xf32> -> vector<16x128xf32>
    %c0_9 = arith.constant 0 : index
    %c0_10 = arith.constant 0 : index
    %12 = vector.load %arg5[%c0_9, %c0_10] : memref<1x128xf32, #tpu.memory_space<vmem>>, vector<1x128xf32>
    %13 = vector.broadcast %12 : vector<1x128xf32> to vector<16x128xf32>
    %14 = arith.addf %11, %13 : vector<16x128xf32>
    %cst_11 = arith.constant 0.000000e+00 : f32
    %15 = vector.broadcast %cst_11 : f32 to vector<16x128xf32>
    %16 = arith.maximumf %14, %15 : vector<16x128xf32>
    %17 = arith.truncf %16 : vector<16x128xf32> to vector<16x128xbf16>
    %c0_12 = arith.constant 0 : index
    %c0_13 = arith.constant 0 : index
    %18 = vector.load %arg6[%c0_12, %c0_13] : memref<128x128xbf16, #tpu.memory_space<vmem>>, vector<128x128xbf16>
    %cst_14 = arith.constant dense<0.000000e+00> : vector<16x128xf32>
    %19 = tpu.matmul %17, %18, %cst_14 {dimension_numbers = #tpu.dot_dimension_numbers<[1], [0], [0], [1], [0, 0, 1, 1], [], []>} : vector<16x128xbf16>, vector<128x128xbf16>, vector<16x128xf32> -> vector<16x128xf32>
    %c0_15 = arith.constant 0 : index
    %c0_16 = arith.constant 0 : index
    %20 = vector.load %arg7[%c0_15, %c0_16] : memref<1x128xf32, #tpu.memory_space<vmem>>, vector<1x128xf32>
    %21 = vector.broadcast %20 : vector<1x128xf32> to vector<16x128xf32>
    %22 = arith.addf %19, %21 : vector<16x128xf32>
    %23 = arith.truncf %22 : vector<16x128xf32> to vector<16x128xbf16>
    %c0_17 = arith.constant 0 : index
    %c0_18 = arith.constant 0 : index
    %24 = vector.load %arg8[%c0_17, %c0_18] : memref<16x128xbf16, #tpu.memory_space<vmem>>, vector<16x128xbf16>
    tpu.vector_store %arg8[%c0_17, %c0_18], %23 {strides = array<i32>} : memref<16x128xbf16, #tpu.memory_space<vmem>>, vector<16x128xbf16>,
    return
  }
  func.func @transform_0(%arg0: i32) -> (i32, i32) {
    %c0_i32 = arith.constant 0 : i32
    %c0_i32_0 = arith.constant 0 : i32
    return %arg0, %c0_i32 : i32, i32
  }
  func.func @transform_1(%arg0: i32) -> (i32, i32) {
    %c0_i32 = arith.constant 0 : i32
    %c0_i32_0 = arith.constant 0 : i32
    %c0_i32_1 = arith.constant 0 : i32
    return %c0_i32, %c0_i32_0 : i32, i32
  }
  func.func @transform_2(%arg0: i32) -> (i32, i32) {
    %c0_i32 = arith.constant 0 : i32
    %c0_i32_0 = arith.constant 0 : i32
    %c0_i32_1 = arith.constant 0 : i32
    return %c0_i32, %c0_i32_0 : i32, i32
  }
  func.func @transform_3(%arg0: i32) -> (i32, i32) {
    %c0_i32 = arith.constant 0 : i32
    %c0_i32_0 = arith.constant 0 : i32
    %c0_i32_1 = arith.constant 0 : i32
    return %c0_i32, %c0_i32_0 : i32, i32
  }
  func.func @transform_4(%arg0: i32) -> (i32, i32) {
    %c0_i32 = arith.constant 0 : i32
    %c0_i32_0 = arith.constant 0 : i32
    %c0_i32_1 = arith.constant 0 : i32
    return %c0_i32, %c0_i32_0 : i32, i32
  }
  func.func @transform_5(%arg0: i32) -> (i32, i32) {
    %c0_i32 = arith.constant 0 : i32
    %c0_i32_0 = arith.constant 0 : i32
    %c0_i32_1 = arith.constant 0 : i32
    return %c0_i32, %c0_i32_0 : i32, i32
  }
  func.func @transform_6(%arg0: i32) -> (i32, i32) {
    %c0_i32 = arith.constant 0 : i32
    %c0_i32_0 = arith.constant 0 : i32
    %c0_i32_1 = arith.constant 0 : i32
    return %c0_i32, %c0_i32_0 : i32, i32
  }
  func.func @transform_7(%arg0: i32) -> (i32, i32) {
    %c0_i32 = arith.constant 0 : i32
    %c0_i32_0 = arith.constant 0 : i32
    return %arg0, %c0_i32 : i32, i32
  }
}

</mosaic_0001>

<bundles_post_ra>
// kernel: tpu_custom_call.1
= control target key start
LH: loop header
LB: loop body
LE: loop exit
PB: predicated region body
PF: predicated region fallthrough
CT: control target
= control target key end

     0   :  { %12 = vsyncpa [#allocation3], 0  ;;  %s635_s0 = inlined_call_operand.hbm [shape: f32[16,16], index: 0, kind: input, shape index: {}]   ;;  %s636_s1 = inlined_call_operand.hbm [shape: bf16[16,128], index: 1, kind: input, shape index: {}]   ;;  %s637_s2 = inlined_call_operand.vmem [shape: f32[1,128], index: 2, kind: input, shape index: {}]   ;;  %s638_s3 = inlined_call_operand.hbm [shape: bf16[128,128], index: 3, kind: input, shape index: {}]   ;;  %s639_s4 = inlined_call_operand.vmem [shape: f32[1,128], index: 4, kind: input, shape index: {}]   ;;  %s640_s5 = inlined_call_operand.hbm [shape: bf16[128,128], index: 5, kind: input, shape index: {}]   ;;  %s641_s6 = inlined_call_operand.vmem [shape: f32[1,128], index: 6, kind: input, shape index: {}]   ;;  %s642_s7 = inlined_call_operand.hbm [shape: bf16[16,128], index: 7, kind: output, shape index: {}]  }
   0x1   :  { %13 = vsyncpa [#allocation6], 0 }
   0x2   :  { %14 = vsyncpa [#allocation9], 0  ;;  %s33_s26 = sshll.u32 %s636_s1, 4  ;;  %s34_s26 = int_to_ptr.hbm [resolvable:$true] %s33_s26 }
   0x3   :  { %15 = vsyncpa [#allocation4], 0  ;;  %s550_s27 = smov [#allocation5]   ;;  %s20_s8 = sshll.u32 %s635_s0, 4  ;;  %s21_s8 = int_to_ptr.hbm [resolvable:$true] %s20_s8 }
   0x4   :  { %s35_s28 = sshll.u32 %s550_s27, 4  ;;  %s551_s9 = smov 64   ;;  %s36_s28 = int_to_ptr.vmem [resolvable:$true] %s35_s28 }
   0x5   :  { %s552_s10 = smov 4   ;;  %s553_s11 = smov [#allocation2]  }
   0x6   :  { %41 = dma.hbm_to_vmem [thread:$0]  %s34_s26, 128, %s36_s28, [#allocation6], %s551_s9, %s551_s9, %s552_s10  }
   0x7   :  { %s22_s12 = sshll.u32 %s553_s11, 4  ;;  %s554_s1 = smov 128   ;;  %s23_s12 = int_to_ptr.vmem [resolvable:$true] %s22_s12 }
   0x8   :  { %s555_s13 = smov 8   ;;  %s48_s16 = sshll.u32 %s638_s3, 4  ;;  %s49_s16 = int_to_ptr.hbm [resolvable:$true] %s48_s16 }
   0x9   :  { %28 = dma.hbm_to_vmem [thread:$0]  %s21_s8, 256, %s23_s12, [#allocation3], %s554_s1, %s554_s1, %s555_s13  }
   0xa   :  { %s556_s17 = smov [#allocation7]   ;;  %s63_s20 = sshll.u32 %s640_s5, 4  ;;  %s64_s20 = int_to_ptr.hbm [resolvable:$true] %s63_s20 }
   0xb   :  { %s50_s0 = sshll.u32 %s556_s17, 4  ;;  %s557_s21 = smov [#allocation8]   ;;  %s51_s0 = int_to_ptr.vmem [resolvable:$true] %s50_s0 }
   0xc   :  { %56 = dma.hbm_to_vmem [thread:$0]  %s49_s16, 1024, %s51_s0, [#allocation6], %s551_s9, %s551_s9, %s552_s10  }
   0xd   :  { %s65_s22 = sshll.u32 %s557_s21, 4  ;;  %s66_s22 = int_to_ptr.vmem [resolvable:$true] %s65_s22 }
   0xe   :  { %71 = dma.hbm_to_vmem [thread:$0]  %s64_s20, 1024, %s66_s22, [#allocation9], %s551_s9, %s551_s9, %s552_s10  }
   0xf   :  { %542 = dma.done.wait [#allocation3], 256  }
  0x10   :  { %543 = vsyncadd [#allocation3], 4294967040 }
  0x11   :  { %544 = dma.done.wait [#allocation6], 1152  }
  0x12   :  { %545 = vsyncadd [#allocation6], 4294966144 }
  0x13   :  { %546 = dma.done.wait [#allocation9], 1024  }
  0x14   :  { %547 = vsyncadd [#allocation9], 4294966272  ;;  %v388_v0 = vld [vmem:[#allocation5] sm:$0xff]  ;;  %v91_v1 = vld [vmem:[#allocation2] sm:$0xff]  ;;  %vm106_vm0 = vcmask 130048   ;;  %s558_s26 = smov [#allocation10]  }
  0x15   :  { %v92_v2 = vld [vmem:[#allocation2 + $0x8] sm:$0xff]  ;;  %v396_v4 = vld [vmem:[#allocation7 + $0x38] sm:$0xff]  ;;  %117 = vmatpush.bf16.msra.mxu0 %v388_v0  ;;  %v394_v6 = vld [vmem:[#allocation7 + $0x28] sm:$0xff]  ;;  %s302_s27 = sshll.u32 %s558_s26, 4  ;;  %s304_s30 = sshll.u32 %s642_s7, 4  ;;  %s303_s27 = int_to_ptr.vmem [resolvable:$true] %s302_s27  ;;  %s305_s30 = int_to_ptr.hbm [resolvable:$true] %s304_s30 }
  0x16   :  { %v93_v3 = vpack.c.bf16 %v92_v2, %v91_v1  ;;  %195 = vmatpush.bf16.msra.mxu1 %v396_v4  ;;  %v395_v5 = vld [vmem:[#allocation7 + $0x30] sm:$0xff]  ;;  %v393_v7 = vld [vmem:[#allocation7 + $0x20] sm:$0xff]  ;;  %v392_v8 = vld [vmem:[#allocation7 + $0x18] sm:$0xff] }
  0x17   :  { %v391_v9 = vld [vmem:[#allocation7 + $0x10] sm:$0xff]  ;;  %v390_v10 = vld [vmem:[#allocation7 + $0x8] sm:$0xff]  ;;  %v389_v11 = vld [vmem:[#allocation7] sm:$0xff] }
  0x18   :  { %323 = vmatmul.msk.bf16.vlgmr.msra.gmra.mxu0 %vm106_vm0, %v93_v3  ;;  %v404_v12 = vld [vmem:[#allocation8 + $0x38] sm:$0xff]  ;;  %v403_v13 = vld [vmem:[#allocation8 + $0x30] sm:$0xff]  ;;  %v402_v14 = vld [vmem:[#allocation8 + $0x28] sm:$0xff] }
  0x19   :  { %280 = vmatpush.bf16.msra.mxu2 %v404_v12  ;;  %v401_v15 = vld [vmem:[#allocation8 + $0x20] sm:$0xff]  ;;  %v419_v17 = vld [vmem:[%s637_s2] ss:$0 sm:$0xff]  ;;  %v400_v24 = vld [vmem:[#allocation8 + $0x18] sm:$0xff] }
  0x1a   :  { %196 = vmatpush.bf16.msra.mxu1 %v395_v5  ;;  %v399_v25 = vld [vmem:[#allocation8 + $0x10] sm:$0xff]  ;;  %v398_v26 = vld [vmem:[#allocation8 + $0x8] sm:$0xff]  ;;  %v397_v27 = vld [vmem:[#allocation8] sm:$0xff] }
  0x1b   :  { %v420_v29 = vld [vmem:[%s639_s4] ss:$0 sm:$0xff] }
  0x1c   :  { %v421_v37 = vld [vmem:[%s641_s6] ss:$0 sm:$0xff] }
  0x1d   :  { %281 = vmatpush.bf16.msra.mxu2 %v403_v13 }
  0x1e   :  { %197 = vmatpush.bf16.msra.mxu1 %v394_v6 }
  0x21   :  { %282 = vmatpush.bf16.msra.mxu2 %v402_v14 }
  0x22   :  { %198 = vmatpush.bf16.msra.mxu1 %v393_v7 }
  0x25   :  { %283 = vmatpush.bf16.msra.mxu2 %v401_v15 }
  0x26   :  { %199 = vmatpush.bf16.msra.mxu1 %v392_v8 }
  0x29   :  { %284 = vmatpush.bf16.msra.mxu2 %v400_v24 }
  0x2a   :  { %200 = vmatpush.bf16.msra.mxu1 %v391_v9 }
  0x2d   :  { %285 = vmatpush.bf16.msra.mxu2 %v399_v25 }
  0x2e   :  { %201 = vmatpush.bf16.msra.mxu1 %v390_v10 }
  0x31   :  { %286 = vmatpush.bf16.msra.mxu2 %v398_v26 }
  0x32   :  { %202 = vmatpush.bf16.msra.mxu1 %v389_v11 }
  0x35   :  { %287 = vmatpush.bf16.msra.mxu2 %v397_v27 }
  0x95   :  { %v119_v16 = vpop.f32.mrf.mxu0 }
  0x96   :  { %v120_v18 = vadd.f32 %v419_v17, %v119_v16 }
  0x98   :  { %v124_v21 = vmax.f32 %v120_v18, 0.0 }
  0x9d   :  { %v121_v19 = vpop.f32.mrf.mxu0 }
  0x9e   :  { %v122_v20 = vadd.f32 %v419_v17, %v121_v19 }
  0xa0   :  { %v125_v22 = vmax.f32 %v122_v20, 0.0 }
  0xa2   :  { %v126_v23 = vpack.c.bf16 %v125_v22, %v124_v21 }
  0xa4   :  { %203 = vmatmul.bf16.vlgmr.msra.gmra.mxu1 %v126_v23 }
 0x121   :  { %v204_v28 = vpop.f32.mrf.mxu1 }
 0x122   :  { %v205_v30 = vadd.f32 %v420_v29, %v204_v28 }
 0x124   :  { %v209_v33 = vmax.f32 %v205_v30, 0.0 }
 0x129   :  { %v206_v31 = vpop.f32.mrf.mxu1 }
 0x12a   :  { %v207_v32 = vadd.f32 %v420_v29, %v206_v31 }
 0x12c   :  { %v210_v34 = vmax.f32 %v207_v32, 0.0 }
 0x12e   :  { %v211_v35 = vpack.c.bf16 %v210_v34, %v209_v33 }
 0x130   :  { %288 = vmatmul.bf16.vlgmr.msra.gmra.mxu2 %v211_v35 }
 0x1b3   :  { %v289_v36 = vpop.f32.mrf.mxu2 }
 0x1b4   :  { %v290_v39 = vadd.f32 %v421_v37, %v289_v36 }
 0x1bb   :  { %v291_v38 = vpop.f32.mrf.mxu2 }
 0x1bc   :  { %v292_v40 = vadd.f32 %v421_v37, %v291_v38 }
 0x1be   :  { %v408_v41 = vpack.c.bf16 %v292_v40, %v290_v39 }
 0x1c0   :  { %409 = vst [vmem:[#allocation10] sm:$0xff] %v408_v41  }
 0x1c1   :  { %310 = dma.vmem_to_hbm [thread:$0]  %s303_s27, 128, %s305_s30, [#allocation4], %s551_s9, %s551_s9, %s552_s10  }
 0x1c2   :  { %548 = dma.done.wait [#allocation4], 128  }
 0x1c3   :  { %549 = vsyncadd [#allocation4], 4294967168 }
 0x1c4   :  { %315 = vsyncpa [#allocation3], 1 }
 0x1c5   :  { %316 = vsyncpa [#allocation6], 1 }
 0x1c6   :  { %317 = vsyncpa [#allocation9], 1 }
 0x1c7   :  { %318 = vsyncpa [#allocation4], 1 }

</bundles_post_ra>
